<compile_context>
chip_gen: v5e
topology: v5e:2x2
jax: 0.10.0
libtpu: 0.0.40
codegen_flags: <defaults>
</compile_context>

<pallas_src>
import functools
import math

import jax
import jax.numpy as jnp
from jax.experimental import pallas as pl
from jax.experimental.pallas import tpu as pltpu


def _gaussian_taps_1d(kernel_size, sigma):
    """Normalized 1-D taps reproducing Gaussiansmoothing.__init__ (per dim).

    NOTE: reproduces the module's (nonstandard) exponent ((x-mean)/(2*std))**2.
    The module's normalized 2-D kernel is exactly the outer product of these
    normalized 1-D taps (separable).
    """
    mean = (kernel_size - 1) / 2.0
    vals = [
        1.0 / (sigma * math.sqrt(2.0 * math.pi))
        * math.exp(-(((i - mean) / (2.0 * sigma)) ** 2))
        for i in range(kernel_size)
    ]
    s = sum(vals)
    return tuple(v / s for v in vals)


def _gauss_smooth_kernel(x_ref, o_ref, tmp_ref, *, taps):
    # x_ref:  VMEM (H, W, C)   one image, channels on the lane axis
    # o_ref:  VMEM (Ho, Wo, C)
    # tmp_ref: VMEM (Ho, W, C) f32 scratch holding the H-pass intermediate
    K = len(taps)
    Ho = o_ref.shape[0]
    Wo = o_ref.shape[1]

    x = x_ref[...].astype(jnp.float32)            # (H, W, C)

    # Pass 1: 1-D Gaussian along H. Shifts are along the outermost dim ->
    # no lane/sublane data movement, just different row offsets.
    acc = taps[0] * x[0:Ho]
    for u in range(1, K):
        acc = acc + taps[u] * x[u:u + Ho]
    tmp_ref[...] = acc                             # (Ho, W, C)

    # Pass 2: 1-D Gaussian along W. Shifts are along the sublane axis; the
    # lane axis (channels) is untouched.
    t = tmp_ref[...]
    acc = taps[0] * t[:, 0:Wo]
    for v in range(1, K):
        acc = acc + taps[v] * t[:, v:v + Wo]

    o_ref[...] = acc.astype(o_ref.dtype)


def gaussian_smoothing_2d(x_nchw, kernel_size, sigma):
    """Forward pass of Gaussiansmoothing (dim=2).

    x_nchw: (N, C, H, W) like the PyTorch module. Returns (N, C, Ho, Wo) with
    Ho = H - K + 1, Wo = W - K + 1 (VALID depthwise conv with the module's
    Gaussian kernel, identical across channels).
    """
    N, C, H, W = x_nchw.shape
    K = int(kernel_size)
    Ho, Wo = H - K + 1, W - K + 1
    taps = _gaussian_taps_1d(K, float(sigma))

    # Layout plumbing: channels onto the lane (last) axis.
    x_nhwc = jnp.transpose(x_nchw, (0, 2, 3, 1))   # (N, H, W, C)

    out_nhwc = pl.pallas_call(
        functools.partial(_gauss_smooth_kernel, taps=taps),
        out_shape=jax.ShapeDtypeStruct((N, Ho, Wo, C), x_nchw.dtype),
        grid=(N,),
        in_specs=[
            pl.BlockSpec((None, H, W, C), lambda n: (n, 0, 0, 0)),
        ],
        out_specs=pl.BlockSpec((None, Ho, Wo, C), lambda n: (n, 0, 0, 0)),
        scratch_shapes=[pltpu.VMEM((Ho, W, C), jnp.float32)],
        compiler_params=pltpu.CompilerParams(
            dimension_semantics=("parallel",),
            vmem_limit_bytes=64 * 1024 * 1024,
        ),
    )(x_nhwc)

    return jnp.transpose(out_nhwc, (0, 3, 1, 2))   # back to NCHW


def make_gaussian_weight(channels, kernel_size, sigma, dim=2):
    """Deterministic init reproducing Gaussiansmoothing.__init__ exactly."""
    ksizes = [kernel_size] * dim
    sigmas = [sigma] * dim
    grids = jnp.meshgrid(*[jnp.arange(s, dtype=jnp.float32) for s in ksizes],
                         indexing="ij")
    kernel = jnp.ones((), jnp.float32)
    for size, std, mgrid in zip(ksizes, sigmas, grids):
        mean = (size - 1) / 2.0
        kernel = kernel * (1.0 / (std * math.sqrt(2 * math.pi))
                           * jnp.exp(-(((mgrid - mean) / (2.0 * std)) ** 2)))
    kernel = kernel / jnp.sum(kernel)
    kernel = kernel.reshape((1, 1) + kernel.shape)            # (1, 1, K, K)
    kernel = jnp.tile(kernel, (channels,) + (1,) * (kernel.ndim - 1))  # (C,1,K,K)
    return kernel


def _reference_depthwise_conv(x, weight):
    # Pure-JAX reference: depthwise VALID conv, groups = channels.
    C = x.shape[1]
    return jax.lax.conv_general_dilated(
        x, weight, window_strides=(1, 1), padding="VALID",
        dimension_numbers=("NCHW", "OIHW", "NCHW"),
        feature_group_count=C,
    )


if __name__ == "__main__":
    N, C, H, W = 2, 4, 16, 16
    K, SIGMA = 3, 1.0

    key = jax.random.PRNGKey(0)
    x = jax.random.normal(key, (N, C, H, W), dtype=jnp.float32)

    out = gaussian_smoothing_2d(x, K, SIGMA)
    out = jax.block_until_ready(out)

    weight = make_gaussian_weight(C, K, SIGMA, dim=2)          # (C, 1, K, K)
    ref = _reference_depthwise_conv(x, weight.astype(jnp.float32))

    assert out.shape == (N, C, H - K + 1, W - K + 1), out.shape
    assert jnp.allclose(out, ref, atol=1e-5, rtol=1e-5), "mismatch vs reference"

    print("KERNEL_OK")
</pallas_src>

<mosaic_0001>
module attributes {stable_mosaic.version = 11 : i64} {
  func.func @_gauss_smooth_kernel(%arg0: i32, %arg1: memref<1x16x16x4xf32, #tpu.memory_space<vmem>>, %arg2: memref<1x14x14x4xf32, #tpu.memory_space<vmem>>, %arg3: memref<14x16x4xf32, #tpu.memory_space<vmem>>) attributes {dimension_semantics = [#tpu.dimension_semantics<parallel>], iteration_bounds = array<i64: 2>, scalar_prefetch = 0 : i64, scratch_operands = 1 : i64, tpu.core_type = #tpu.core_type<tc>, window_params = [{transform_indices = @transform_0, window_bounds = array<i64: 1, 16, 16, 4>}, {transform_indices = @transform_1, window_bounds = array<i64: 1, 14, 14, 4>}]} {
    %c0 = arith.constant 0 : index
    %c0_0 = arith.constant 0 : index
    %c0_1 = arith.constant 0 : index
    %c0_2 = arith.constant 0 : index
    %0 = vector.load %arg1[%c0, %c0_0, %c0_1, %c0_2] : memref<1x16x16x4xf32, #tpu.memory_space<vmem>>, vector<1x16x16x4xf32>
    %1 = vector.shape_cast %0 : vector<1x16x16x4xf32> to vector<16x16x4xf32>
    %2 = vector.extract_strided_slice %1 {offsets = [0, 0, 0], sizes = [14, 16, 4], strides = [1, 1, 1]} : vector<16x16x4xf32> to vector<14x16x4xf32>
    %cst = arith.constant 0.304504335 : f32
    %3 = vector.broadcast %cst : f32 to vector<14x16x4xf32>
    %4 = arith.mulf %3, %2 : vector<14x16x4xf32>
    %5 = vector.extract_strided_slice %1 {offsets = [1, 0, 0], sizes = [14, 16, 4], strides = [1, 1, 1]} : vector<16x16x4xf32> to vector<14x16x4xf32>
    %cst_3 = arith.constant 0.3909913 : f32
    %6 = vector.broadcast %cst_3 : f32 to vector<14x16x4xf32>
    %7 = arith.mulf %6, %5 : vector<14x16x4xf32>
    %8 = arith.addf %4, %7 : vector<14x16x4xf32>
    %9 = vector.extract_strided_slice %1 {offsets = [2, 0, 0], sizes = [14, 16, 4], strides = [1, 1, 1]} : vector<16x16x4xf32> to vector<14x16x4xf32>
    %cst_4 = arith.constant 0.304504335 : f32
    %10 = vector.broadcast %cst_4 : f32 to vector<14x16x4xf32>
    %11 = arith.mulf %10, %9 : vector<14x16x4xf32>
    %12 = arith.addf %8, %11 : vector<14x16x4xf32>
    %c0_5 = arith.constant 0 : index
    %c0_6 = arith.constant 0 : index
    %c0_7 = arith.constant 0 : index
    %13 = vector.load %arg3[%c0_5, %c0_6, %c0_7] : memref<14x16x4xf32, #tpu.memory_space<vmem>>, vector<14x16x4xf32>
    tpu.vector_store %arg3[%c0_5, %c0_6, %c0_7], %12 {strides = array<i32>} : memref<14x16x4xf32, #tpu.memory_space<vmem>>, vector<14x16x4xf32>,
    %c0_8 = arith.constant 0 : index
    %c0_9 = arith.constant 0 : index
    %c0_10 = arith.constant 0 : index
    %14 = vector.load %arg3[%c0_8, %c0_9, %c0_10] : memref<14x16x4xf32, #tpu.memory_space<vmem>>, vector<14x16x4xf32>
    %15 = vector.extract_strided_slice %14 {offsets = [0, 0, 0], sizes = [14, 14, 4], strides = [1, 1, 1]} : vector<14x16x4xf32> to vector<14x14x4xf32>
    %cst_11 = arith.constant 0.304504335 : f32
    %16 = vector.broadcast %cst_11 : f32 to vector<14x14x4xf32>
    %17 = arith.mulf %16, %15 : vector<14x14x4xf32>
    %18 = vector.extract_strided_slice %14 {offsets = [0, 1, 0], sizes = [14, 14, 4], strides = [1, 1, 1]} : vector<14x16x4xf32> to vector<14x14x4xf32>
    %cst_12 = arith.constant 0.3909913 : f32
    %19 = vector.broadcast %cst_12 : f32 to vector<14x14x4xf32>
    %20 = arith.mulf %19, %18 : vector<14x14x4xf32>
    %21 = arith.addf %17, %20 : vector<14x14x4xf32>
    %22 = vector.extract_strided_slice %14 {offsets = [0, 2, 0], sizes = [14, 14, 4], strides = [1, 1, 1]} : vector<14x16x4xf32> to vector<14x14x4xf32>
    %cst_13 = arith.constant 0.304504335 : f32
    %23 = vector.broadcast %cst_13 : f32 to vector<14x14x4xf32>
    %24 = arith.mulf %23, %22 : vector<14x14x4xf32>
    %25 = arith.addf %21, %24 : vector<14x14x4xf32>
    %c0_14 = arith.constant 0 : index
    %c0_15 = arith.constant 0 : index
    %c0_16 = arith.constant 0 : index
    %c0_17 = arith.constant 0 : index
    %26 = vector.load %arg2[%c0_14, %c0_15, %c0_16, %c0_17] : memref<1x14x14x4xf32, #tpu.memory_space<vmem>>, vector<1x14x14x4xf32>
    %27 = vector.shape_cast %26 : vector<1x14x14x4xf32> to vector<14x14x4xf32>
    %28 = vector.shape_cast %25 : vector<14x14x4xf32> to vector<1x14x14x4xf32>
    tpu.vector_store %arg2[%c0_14, %c0_15, %c0_16, %c0_17], %28 {strides = array<i32>} : memref<1x14x14x4xf32, #tpu.memory_space<vmem>>, vector<1x14x14x4xf32>,
    return
  }
  func.func @transform_0(%arg0: i32) -> (i32, i32, i32, i32) {
    %c0_i32 = arith.constant 0 : i32
    %c0_i32_0 = arith.constant 0 : i32
    %c0_i32_1 = arith.constant 0 : i32
    %c0_i32_2 = arith.constant 0 : i32
    return %arg0, %c0_i32, %c0_i32_0, %c0_i32_1 : i32, i32, i32, i32
  }
  func.func @transform_1(%arg0: i32) -> (i32, i32, i32, i32) {
    %c0_i32 = arith.constant 0 : i32
    %c0_i32_0 = arith.constant 0 : i32
    %c0_i32_1 = arith.constant 0 : i32
    %c0_i32_2 = arith.constant 0 : i32
    return %arg0, %c0_i32, %c0_i32_0, %c0_i32_1 : i32, i32, i32, i32
  }
}

</mosaic_0001>

<bundles_post_ra>
// kernel: tpu_custom_call.1
= control target key start
LH: loop header
LB: loop body
LE: loop exit
PB: predicated region body
PF: predicated region fallthrough
CT: control target
= control target key end

     0   :  { %s754_s6 = smov 0   ;;  %s1133_s0 = inlined_call_operand.vmem [shape: f32[2,16,16,4], index: 0, kind: input, shape index: {}]   ;;  %s1134_s1 = inlined_call_operand.vmem [shape: f32[2,14,14,4], index: 1, kind: output, shape index: {}]  }
   0x1 LB: > { %s716_s7 = sadd.s32 4294967295, %s742_s6   ;;  %p720_p0 = scmp.ge.s32.totalorder %s742_s6, 1  ;;  %s742_s6 = sphi %s754_s6, %s11_s6  }
   0x2   : > { %p87_p1 = scmp.lt.s32.totalorder %s742_s6, 3 }
   0x4   : > { %p88_p2 = pnand %p720_p0, %p87_p1 }
   0x5   : > { %p107_p3 = scmp.lt.s32.totalorder (!%p88_p2), %s716_s7, 1 }
   0x6   : > { %91 = sbr.rel (%p88_p2) target bundleno = 105 (0x69), region = 24 }
   0xb   : > { %s1160_s7 = smov (!%p107_p3, %s716_s7), 1  ;;  %vm265_vm0 = vcmask 31744   ;;  %vm633_vm1 = vcmask 29696   ;;  %vm406_vm2 = vcmask 1046528   ;;  %vm533_vm3 = vcmask 1045504  }
   0xc   : > { %s726_s8 = sshll.u32 %s1160_s7, 8  ;;  %s727_s12 = smul.u32 224, %s1160_s7 }
   0xd   : > { %s768_s11 = scalar_lea.vmem %s1133_s0, %s726_s8 }
   0xe   : > { %v117_v0 = vld [vmem:[%s768_s11] sm:$0xff]  ;;  %v119_v1 = vld [vmem:[%s768_s11 + $0x10] sm:$0xff]  ;;  %v118_v6 = vld [vmem:[%s768_s11 + $0x8] sm:$0xff]  ;;  %s857_s15 = scalar_lea.vmem %s1134_s1, %s727_s12 }
   0xf   : > { %v121_v2 = vld [vmem:[%s768_s11 + $0x20] sm:$0xff]  ;;  %v149_v3 = vmul.f32 0.30450433, %v117_v0  ;;  %v177_v5 = vmul.f32 0.3909913, %v119_v1  ;;  %v120_v7 = vld [vmem:[%s768_s11 + $0x18] sm:$0xff] }
  0x10   : > { %v153_v4 = vmul.f32 0.30450433, %v121_v2  ;;  %v122_v8 = vld [vmem:[%s768_s11 + $0x28] sm:$0xff]  ;;  %v151_v9 = vmul.f32 0.30450433, %v119_v1  ;;  %v123_v14 = vld [vmem:[%s768_s11 + $0x30] sm:$0xff] }
  0x11   : > { %v205_v10 = vadd.f32 %v177_v5, %v149_v3  ;;  %v150_v11 = vmul.f32 0.30450433, %v118_v6  ;;  %v154_v12 = vmul.f32 0.30450433, %v122_v8  ;;  %v178_v13 = vmul.f32 0.3909913, %v120_v7 }
  0x12   : > { %v179_v15 = vmul.f32 0.3909913, %v121_v2  ;;  %v124_v16 = vld [vmem:[%s768_s11 + $0x38] sm:$0xff]  ;;  %v152_v17 = vmul.f32 0.30450433, %v120_v7  ;;  %v125_v22 = vld [vmem:[%s768_s11 + $0x40] sm:$0xff] }
  0x13   : > { %v237_v18 = vadd.f32 %v205_v10, %v153_v4  ;;  %v206_v19 = vadd.f32 %v178_v13, %v150_v11  ;;  %v155_v20 = vmul.f32 0.30450433, %v123_v14  ;;  %v156_v21 = vmul.f32 0.30450433, %v124_v16  ;;  %v126_v23 = vld [vmem:[%s768_s11 + $0x48] sm:$0xff]  ;;  %v127_v31 = vld [vmem:[%s768_s11 + $0x50] sm:$0xff] }
  0x14   : > { %v207_v24 = vadd.f32 %v179_v15, %v151_v9  ;;  %v180_v25 = vmul.f32 0.3909913, %v122_v8  ;;  %v157_v26 = vmul.f32 0.30450433, %v125_v22  ;;  %v181_v27 = vmul.f32 0.3909913, %v123_v14 }
  0x15   : > { %266 = vst.msk [vmem:[#allocation2] sm:$0xff] %vm265_vm0, %v237_v18  ;;  %v238_v28 = vadd.f32 %v206_v19, %v154_v12  ;;  %v158_v29 = vmul.f32 0.30450433, %v126_v23  ;;  %v182_v30 = vmul.f32 0.3909913, %v124_v16  ;;  %v128_v36 = vld [vmem:[%s768_s11 + $0x58] sm:$0xff] }
  0x16   : > { %v239_v32 = vadd.f32 %v207_v24, %v155_v20  ;;  %v208_v33 = vadd.f32 %v180_v25, %v152_v17  ;;  %v209_v34 = vadd.f32 %v181_v27, %v153_v4  ;;  %v159_v35 = vmul.f32 0.30450433, %v127_v31  ;;  %v129_v37 = vld [vmem:[%s768_s11 + $0x60] sm:$0xff]  ;;  %v130_v38 = vld [vmem:[%s768_s11 + $0x68] sm:$0xff]  ;;  %v131_v42 = vld [vmem:[%s768_s11 + $0x70] sm:$0xff] }
  0x17   : > { %267 = vst.msk [vmem:[#allocation2 + $0x8] sm:$0xff] %vm265_vm0, %v238_v28  ;;  %v210_v39 = vadd.f32 %v182_v30, %v154_v12  ;;  %v183_v40 = vmul.f32 0.3909913, %v125_v22  ;;  %v160_v41 = vmul.f32 0.30450433, %v128_v36  ;;  %v132_v47 = vld [vmem:[%s768_s11 + $0x78] sm:$0xff] }
  0x18   : > { %268 = vst.msk [vmem:[#allocation2 + $0x10] sm:$0xff] %vm265_vm0, %v239_v32  ;;  %v240_v43 = vadd.f32 %v208_v33, %v156_v21  ;;  %v241_v44 = vadd.f32 %v209_v34, %v157_v26  ;;  %v184_v45 = vmul.f32 0.3909913, %v126_v23  ;;  %v161_v46 = vmul.f32 0.30450433, %v129_v37  ;;  %v133_v52 = vld [vmem:[%s768_s11 + $0x80] sm:$0xff] }
  0x19   : > { %v242_v48 = vadd.f32 %v210_v39, %v158_v29  ;;  %v211_v49 = vadd.f32 %v183_v40, %v155_v20  ;;  %v185_v50 = vmul.f32 0.3909913, %v127_v31  ;;  %v162_v51 = vmul.f32 0.30450433, %v130_v38  ;;  %v134_v56 = vld [vmem:[%s768_s11 + $0x88] sm:$0xff]  ;;  %v135_v61 = vld [vmem:[%s768_s11 + $0x90] sm:$0xff] }
  0x1a   : > { %269 = vst.msk [vmem:[#allocation2 + $0x18] sm:$0xff] %vm265_vm0, %v240_v43  ;;  %v212_v53 = vadd.f32 %v184_v45, %v156_v21  ;;  %v186_v54 = vmul.f32 0.3909913, %v128_v36  ;;  %v163_v55 = vmul.f32 0.30450433, %v131_v42  ;;  %v136_v2 = vld [vmem:[%s768_s11 + $0x98] sm:$0xff] }
  0x1b   : > { %270 = vst.msk [vmem:[#allocation2 + $0x20] sm:$0xff] %vm265_vm0, %v241_v44  ;;  %v243_v57 = vadd.f32 %v211_v49, %v159_v35  ;;  %v213_v58 = vadd.f32 %v185_v50, %v157_v26  ;;  %v187_v59 = vmul.f32 0.3909913, %v129_v37  ;;  %v164_v60 = vmul.f32 0.30450433, %v132_v47  ;;  %v137_v7 = vld [vmem:[%s768_s11 + $0xa0] sm:$0xff] }
  0x1c   : > { %271 = vst.msk [vmem:[#allocation2 + $0x28] sm:$0xff] %vm265_vm0, %v242_v48  ;;  %v244_v62 = vadd.f32 %v212_v53, %v160_v41  ;;  %v214_v63 = vadd.f32 %v186_v54, %v158_v29  ;;  %v188_v0 = vmul.f32 0.3909913, %v130_v38  ;;  %v165_v1 = vmul.f32 0.30450433, %v133_v52  ;;  %v138_v12 = vld [vmem:[%s768_s11 + $0xa8] sm:$0xff] }
  0x1d   : > { %272 = vst.msk [vmem:[#allocation2 + $0x30] sm:$0xff] %vm265_vm0, %v243_v57  ;;  %v245_v3 = vadd.f32 %v213_v58, %v161_v46  ;;  %v215_v4 = vadd.f32 %v187_v59, %v159_v35  ;;  %v189_v5 = vmul.f32 0.3909913, %v131_v42  ;;  %v166_v6 = vmul.f32 0.30450433, %v134_v56  ;;  %v139_v17 = vld [vmem:[%s768_s11 + $0xb0] sm:$0xff] }
  0x1e   : > { %273 = vst.msk [vmem:[#allocation2 + $0x38] sm:$0xff] %vm265_vm0, %v244_v62  ;;  %v246_v8 = vadd.f32 %v214_v63, %v162_v51  ;;  %v216_v9 = vadd.f32 %v188_v0, %v160_v41  ;;  %v190_v10 = vmul.f32 0.3909913, %v132_v47  ;;  %v167_v11 = vmul.f32 0.30450433, %v135_v61  ;;  %v140_v22 = vld [vmem:[%s768_s11 + $0xb8] sm:$0xff] }
  0x1f   : > { %274 = vst.msk [vmem:[#allocation2 + $0x40] sm:$0xff] %vm265_vm0, %v245_v3  ;;  %v247_v13 = vadd.f32 %v215_v4, %v163_v55  ;;  %v217_v14 = vadd.f32 %v189_v5, %v161_v46  ;;  %v191_v15 = vmul.f32 0.3909913, %v133_v52  ;;  %v168_v16 = vmul.f32 0.30450433, %v136_v2  ;;  %v141_v27 = vld [vmem:[%s768_s11 + $0xc0] sm:$0xff] }
  0x20   : > { %275 = vst.msk [vmem:[#allocation2 + $0x48] sm:$0xff] %vm265_vm0, %v246_v8  ;;  %v248_v18 = vadd.f32 %v216_v9, %v164_v60  ;;  %v218_v19 = vadd.f32 %v190_v10, %v162_v51  ;;  %v192_v20 = vmul.f32 0.3909913, %v134_v56  ;;  %v169_v21 = vmul.f32 0.30450433, %v137_v7  ;;  %v142_v32 = vld [vmem:[%s768_s11 + $0xc8] sm:$0xff] }
  0x21   : > { %276 = vst.msk [vmem:[#allocation2 + $0x50] sm:$0xff] %vm265_vm0, %v247_v13  ;;  %v249_v23 = vadd.f32 %v217_v14, %v165_v1  ;;  %v219_v24 = vadd.f32 %v191_v15, %v163_v55  ;;  %v193_v25 = vmul.f32 0.3909913, %v135_v61  ;;  %v170_v26 = vmul.f32 0.30450433, %v138_v12  ;;  %v143_v37 = vld [vmem:[%s768_s11 + $0xd0] sm:$0xff] }
  0x22   : > { %277 = vst.msk [vmem:[#allocation2 + $0x58] sm:$0xff] %vm265_vm0, %v248_v18  ;;  %v250_v28 = vadd.f32 %v218_v19, %v166_v6  ;;  %v220_v29 = vadd.f32 %v192_v20, %v164_v60  ;;  %v194_v30 = vmul.f32 0.3909913, %v136_v2  ;;  %v171_v31 = vmul.f32 0.30450433, %v139_v17  ;;  %v144_v42 = vld [vmem:[%s768_s11 + $0xd8] sm:$0xff] }
  0x23   : > { %278 = vst.msk [vmem:[#allocation2 + $0x60] sm:$0xff] %vm265_vm0, %v249_v23  ;;  %v251_v33 = vadd.f32 %v219_v24, %v167_v11  ;;  %v221_v34 = vadd.f32 %v193_v25, %v165_v1  ;;  %v195_v35 = vmul.f32 0.3909913, %v137_v7  ;;  %v172_v36 = vmul.f32 0.30450433, %v140_v22  ;;  %v145_v51 = vld [vmem:[%s768_s11 + $0xe0] sm:$0xff] }
  0x24   : > { %279 = vst.msk [vmem:[#allocation2 + $0x68] sm:$0xff] %vm265_vm0, %v250_v28  ;;  %v252_v38 = vadd.f32 %v220_v29, %v168_v16  ;;  %v222_v39 = vadd.f32 %v194_v30, %v166_v6  ;;  %v196_v40 = vmul.f32 0.3909913, %v138_v12  ;;  %v173_v41 = vmul.f32 0.30450433, %v141_v27  ;;  %v146_v56 = vld [vmem:[%s768_s11 + $0xe8] sm:$0xff] }
  0x25   : > { %280 = vst.msk [vmem:[#allocation2 + $0x70] sm:$0xff] %vm265_vm0, %v251_v33  ;;  %v253_v43 = vadd.f32 %v221_v34, %v169_v21  ;;  %v223_v44 = vadd.f32 %v195_v35, %v167_v11  ;;  %v197_v45 = vmul.f32 0.3909913, %v139_v17  ;;  %v174_v46 = vmul.f32 0.30450433, %v142_v32  ;;  %v147_v61 = vld [vmem:[%s768_s11 + $0xf0] sm:$0xff] }
  0x26   : > { %281 = vst.msk [vmem:[#allocation2 + $0x78] sm:$0xff] %vm265_vm0, %v252_v38  ;;  %v254_v47 = vadd.f32 %v222_v39, %v170_v26  ;;  %v224_v48 = vadd.f32 %v196_v40, %v168_v16  ;;  %v198_v49 = vmul.f32 0.3909913, %v140_v22  ;;  %v175_v50 = vmul.f32 0.30450433, %v143_v37  ;;  %v148_v2 = vld [vmem:[%s768_s11 + $0xf8] sm:$0xff] }
  0x27   : > { %282 = vst.msk [vmem:[#allocation2 + $0x80] sm:$0xff] %vm265_vm0, %v253_v43  ;;  %v255_v52 = vadd.f32 %v223_v44, %v171_v31  ;;  %v225_v53 = vadd.f32 %v197_v45, %v169_v21  ;;  %v199_v54 = vmul.f32 0.3909913, %v141_v27  ;;  %v176_v55 = vmul.f32 0.30450433, %v144_v42  ;;  %v295_v7 = vld [vmem:[#allocation2 + $0x8] sm:$0xff] }
  0x28   : > { %283 = vst.msk [vmem:[#allocation2 + $0x88] sm:$0xff] %vm265_vm0, %v254_v47  ;;  %v256_v57 = vadd.f32 %v224_v48, %v172_v36  ;;  %v226_v58 = vadd.f32 %v198_v49, %v170_v26  ;;  %v200_v59 = vmul.f32 0.3909913, %v142_v32  ;;  %v201_v60 = vmul.f32 0.3909913, %v143_v37  ;;  %v297_v12 = vld [vmem:[#allocation2 + $0x18] sm:$0xff] }
  0x29   : > { %284 = vst.msk [vmem:[#allocation2 + $0x90] sm:$0xff] %vm265_vm0, %v255_v52  ;;  %v257_v62 = vadd.f32 %v225_v53, %v173_v41  ;;  %v227_v63 = vadd.f32 %v199_v54, %v171_v31  ;;  %v233_v0 = vmul.f32 0.30450433, %v145_v51  ;;  %v202_v1 = vmul.f32 0.3909913, %v144_v42  ;;  %v299_v17 = vld [vmem:[#allocation2 + $0x28] sm:$0xff] }
  0x2a   : > { %285 = vst.msk [vmem:[#allocation2 + $0x98] sm:$0xff] %vm265_vm0, %v256_v57  ;;  %v258_v3 = vadd.f32 %v226_v58, %v174_v46  ;;  %v228_v4 = vadd.f32 %v200_v59, %v172_v36  ;;  %v229_v5 = vadd.f32 %v201_v60, %v173_v41  ;;  %v234_v6 = vmul.f32 0.30450433, %v146_v56  ;;  %v301_v25 = vld [vmem:[#allocation2 + $0x38] sm:$0xff]  ;;  %v303_v29 = vld [vmem:[#allocation2 + $0x48] sm:$0xff] }
  0x2b   : > { %286 = vst.msk [vmem:[#allocation2 + $0xa0] sm:$0xff] %vm265_vm0, %v257_v62  ;;  %v259_v8 = vadd.f32 %v227_v63, %v175_v50  ;;  %v230_v9 = vadd.f32 %v202_v1, %v174_v46  ;;  %v203_v10 = vmul.f32 0.3909913, %v145_v51  ;;  %v235_v11 = vmul.f32 0.30450433, %v147_v61  ;;  %v305_v34 = vld [vmem:[#allocation2 + $0x58] sm:$0xff] }
  0x2c   : > { %287 = vst.msk [vmem:[#allocation2 + $0xa8] sm:$0xff] %vm265_vm0, %v258_v3  ;;  %v260_v13 = vadd.f32 %v228_v4, %v176_v55  ;;  %v261_v14 = vadd.f32 %v233_v0, %v229_v5  ;;  %v204_v15 = vmul.f32 0.3909913, %v146_v56  ;;  %v236_v16 = vmul.f32 0.30450433, %v148_v2  ;;  %v307_v47 = vld [vmem:[#allocation2 + $0x68] sm:$0xff] }
  0x2d   : > { %288 = vst.msk [vmem:[#allocation2 + $0xb0] sm:$0xff] %vm265_vm0, %v259_v8  ;;  %v262_v18 = vadd.f32 %v234_v6, %v230_v9  ;;  %v231_v19 = vadd.f32 %v203_v10, %v175_v50  ;;  %v826_v20 = vmul.f32 0.30450433, %v295_v7  ;;  %v828_v21 = vmul.f32 0.3909913, %v295_v7  ;;  %v309_v52 = vld [vmem:[#allocation2 + $0x78] sm:$0xff] }
  0x2e   : > { %289 = vst.msk [vmem:[#allocation2 + $0xb8] sm:$0xff] %vm265_vm0, %v260_v13  ;;  %v232_v22 = vadd.f32 %v204_v15, %v176_v55  ;;  %v831_v23 = vmul.f32 0.30450433, %v297_v12  ;;  %v833_v24 = vmul.f32 0.3909913, %v297_v12 }
  0x2f   : > { %290 = vst.msk [vmem:[#allocation2 + $0xc0] sm:$0xff] %vm265_vm0, %v261_v14  ;;  %v263_v26 = vadd.f32 %v235_v11, %v231_v19  ;;  %v408_v27 = vrot.slane %v828_v21, 1  ;;  %v837_v28 = vmul.f32 0.30450433, %v299_v17  ;;  %v535_v31 = vrot.slane %v826_v20, 2  ;;  %v311_v53 = vld [vmem:[#allocation2 + $0x88] sm:$0xff] }
  0x30   : > { %291 = vst.msk [vmem:[#allocation2 + $0xc8] sm:$0xff] %vm265_vm0, %v262_v18  ;;  %v264_v30 = vadd.f32 %v236_v16, %v232_v22  ;;  %v411_v32 = vrot.slane %v833_v24, 1  ;;  %v842_v33 = vmul.f32 0.3909913, %v299_v17  ;;  %v538_v36 = vrot.slane %v831_v23, 2 }
  0x31   : > { %292 = vst.msk [vmem:[#allocation2 + $0xd0] sm:$0xff] %vm265_vm0, %v263_v26  ;;  %v478_v35 = vadd.f32 %v408_v27, %v826_v20  ;;  %v849_v37 = vmul.f32 0.30450433, %v301_v25  ;;  %v851_v38 = vmul.f32 0.3909913, %v301_v25  ;;  %v541_v44 = vrot.slane %v837_v28, 2 }
  0x32   : > { %293 = vst.msk [vmem:[#allocation2 + $0xd8] sm:$0xff] %vm265_vm0, %v264_v30  ;;  %v480_v39 = vadd.f32 %v411_v32, %v831_v23  ;;  %v414_v40 = vrot.slane %v842_v33, 1  ;;  %v863_v41 = vmul.f32 0.30450433, %v303_v29  ;;  %v865_v42 = vmul.f32 0.3909913, %v303_v29 }
  0x33   : > { %v605_v43 = vadd.f32 %v535_v31, %v478_v35  ;;  %v417_v45 = vrot.slane %v851_v38, 1  ;;  %v871_v46 = vmul.f32 0.30450433, %v305_v34  ;;  %v544_v50 = vrot.slane %v849_v37, 2  ;;  %v313_v58 = vld [vmem:[#allocation2 + $0x98] sm:$0xff]  ;;  %v315_v3 = vld [vmem:[#allocation2 + $0xa8] sm:$0xff] }
  0x34   : > { %v607_v48 = vadd.f32 %v538_v36, %v480_v39  ;;  %v482_v49 = vadd.f32 %v414_v40, %v837_v28  ;;  %v420_v51 = vrot.slane %v865_v42, 1  ;;  %v547_v55 = vrot.slane %v863_v41, 2 }
  0x35   : > { %634 = vst.msk [vmem:[%s857_s15 + $0x8] sm:$0x3f] %vm633_vm1, %v605_v43  ;;  %v484_v54 = vadd.f32 %v417_v45, %v849_v37  ;;  %v886_v56 = vmul.f32 0.3909913, %v305_v34  ;;  %v550_v57 = vrot.slane %v871_v46, 2  ;;  %v317_v7 = vld [vmem:[#allocation2 + $0xb8] sm:$0xff] }
  0x36   : > { %636 = vst.msk [vmem:[%s857_s15 + $0x18] sm:$0x3f] %vm633_vm1, %v607_v48  ;;  %v609_v59 = vadd.f32 %v541_v44, %v482_v49  ;;  %v486_v60 = vadd.f32 %v420_v51, %v863_v41  ;;  %v896_v61 = vmul.f32 0.30450433, %v307_v47  ;;  %v898_v62 = vmul.f32 0.3909913, %v307_v47 }
  0x37   : > { %v611_v63 = vadd.f32 %v544_v50, %v484_v54  ;;  %v423_v0 = vrot.slane %v886_v56, 1  ;;  %v903_v1 = vmul.f32 0.30450433, %v309_v52  ;;  %v905_v2 = vmul.f32 0.3909913, %v309_v52  ;;  %v319_v30 = vld [vmem:[#allocation2 + $0xc8] sm:$0xff] }
  0x38   : > { %638 = vst.msk [vmem:[%s857_s15 + $0x28] sm:$0x3f] %vm633_vm1, %v609_v59  ;;  %v613_v4 = vadd.f32 %v547_v55, %v486_v60  ;;  %v426_v5 = vrot.slane %v898_v62, 1  ;;  %v912_v6 = vmul.f32 0.30450433, %v311_v53  ;;  %v553_v9 = vrot.slane %v896_v61, 2 }
  0x39   : > { %640 = vst.msk [vmem:[%s857_s15 + $0x38] sm:$0x3f] %vm633_vm1, %v611_v63  ;;  %v488_v8 = vadd.f32 %v423_v0, %v871_v46  ;;  %v1146_v10 = vrot.slane %v905_v2, 1  ;;  %v921_v11 = vmul.f32 0.3909913, %v311_v53  ;;  %v1145_v13 = vrot.slane %v903_v1, 2 }
  0x3a   : > { %642 = vst.msk [vmem:[%s857_s15 + $0x48] sm:$0x3f] %vm633_vm1, %v613_v4  ;;  %v490_v12 = vadd.f32 %v426_v5, %v896_v61  ;;  %v1140_v14 = vrot.slane %v912_v6, 2  ;;  %v930_v15 = vmul.f32 0.30450433, %v313_v58  ;;  %v321_v47 = vld [vmem:[#allocation2 + $0xd8] sm:$0xff] }
  0x3b   : > { %v615_v16 = vadd.f32 %v550_v57, %v488_v8  ;;  %v492_v17 = vadd.f32 %v1146_v10, %v903_v1  ;;  %v1141_v18 = vrot.slane %v921_v11, 1  ;;  %v938_v19 = vmul.f32 0.3909913, %v313_v58  ;;  %v294_v60 = vld [vmem:[#allocation2] sm:$0xff]  ;;  %v296_v8 = vld [vmem:[#allocation2 + $0x10] sm:$0xff] }
  0x3c   : > { %v617_v22 = vadd.f32 %v553_v9, %v490_v12  ;;  %v1138_v25 = vrot.slane %v930_v15, 2  ;;  %v943_v26 = vmul.f32 0.30450433, %v315_v3  ;;  %v945_v29 = vmul.f32 0.3909913, %v315_v3 }
  0x3d   : > { %644 = vst.msk [vmem:[%s857_s15 + $0x58] sm:$0x3f] %vm633_vm1, %v615_v16  ;;  %v619_v34 = vadd.f32 %v1145_v13, %v492_v17  ;;  %v494_v35 = vadd.f32 %v1141_v18, %v912_v6  ;;  %v1139_v39 = vrot.slane %v938_v19, 1  ;;  %v955_v43 = vmul.f32 0.30450433, %v317_v7  ;;  %v300_v18 = vld [vmem:[#allocation2 + $0x30] sm:$0xff] }
  0x3e   : > { %646 = vst.msk [vmem:[%s857_s15 + $0x68] sm:$0x3f] %vm633_vm1, %v617_v22  ;;  %v1137_v48 = vrot.slane %v945_v29, 1  ;;  %v1136_v49 = vrot.slane %v943_v26, 2  ;;  %v961_v52 = vmul.f32 0.3909913, %v317_v7 }
  0x3f   : > { %648 = vst.msk [vmem:[%s857_s15 + $0x78] sm:$0x3f] %vm633_vm1, %v619_v34  ;;  %v621_v53 = vadd.f32 %v1140_v14, %v494_v35  ;;  %v496_v54 = vadd.f32 %v1139_v39, %v930_v15  ;;  %v1142_v58 = vrot.slane %v955_v43, 2  ;;  %v971_v59 = vmul.f32 0.30450433, %v319_v30 }
  0x40   : > { %v498_v63 = vadd.f32 %v1137_v48, %v943_v26  ;;  %v1135_v3 = vrot.slane %v961_v52, 1  ;;  %v977_v4 = vmul.f32 0.3909913, %v319_v30  ;;  %v979_v7 = vmul.f32 0.30450433, %v321_v47 }
  0x41   : > { %650 = vst.msk [vmem:[%s857_s15 + $0x88] sm:$0x3f] %vm633_vm1, %v621_v53  ;;  %v623_v12 = vadd.f32 %v1138_v25, %v496_v54  ;;  %v571_v16 = vrot.slane %v971_v59, 2  ;;  %v986_v17 = vmul.f32 0.3909913, %v321_v47  ;;  %v298_v53 = vld [vmem:[#allocation2 + $0x20] sm:$0xff] }
  0x42   : > { %v625_v22 = vadd.f32 %v1136_v49, %v498_v63  ;;  %v500_v30 = vadd.f32 %v1135_v3, %v955_v43  ;;  %v1143_v34 = vrot.slane %v977_v4, 1  ;;  %v574_v35 = vrot.slane %v979_v7, 2 }
  0x43   : > { %652 = vst.msk [vmem:[%s857_s15 + $0x98] sm:$0x3f] %vm633_vm1, %v623_v12  ;;  %v1144_v54 = vrot.slane %v986_v17, 1  ;;  %v322_v47 = vmul.f32 0.30450433, %v294_v60 }
  0x44   : > { %654 = vst.msk [vmem:[%s857_s15 + $0xa8] sm:$0x3f] %vm633_vm1, %v625_v22  ;;  %v627_v63 = vadd.f32 %v1142_v58, %v500_v30  ;;  %v502_v3 = vadd.f32 %v1143_v34, %v971_v59  ;;  %v350_v49 = vmul.f32 0.3909913, %v294_v60  ;;  %v324_v48 = vmul.f32 0.30450433, %v296_v8 }
  0x45   : > { %v504_v12 = vadd.f32 %v1144_v54, %v979_v7  ;;  %v534_v25 = vrot.slane %v322_v47, 2  ;;  %v352_v39 = vmul.f32 0.3909913, %v296_v8  ;;  %v326_v14 = vmul.f32 0.30450433, %v298_v53  ;;  %v302_v8 = vld [vmem:[#allocation2 + $0x40] sm:$0xff] }
  0x46   : > { %656 = vst.msk [vmem:[%s857_s15 + $0xb8] sm:$0x3f] %vm633_vm1, %v627_v63  ;;  %v629_v22 = vadd.f32 %v571_v16, %v502_v3  ;;  %v407_v30 = vrot.slane %v350_v49, 1  ;;  %v537_v58 = vrot.slane %v324_v48, 2  ;;  %v354_v34 = vmul.f32 0.3909913, %v298_v53 }
  0x47   : > { %v631_v60 = vadd.f32 %v574_v35, %v504_v12  ;;  %v536_v54 = vsel %vm533_vm3, %v534_v25, %v535_v31  ;;  %v410_v13 = vrot.slane %v352_v39, 1  ;;  %v540_v3 = vrot.slane %v326_v14, 2  ;;  %v304_v39 = vld [vmem:[#allocation2 + $0x50] sm:$0xff] }
  0x48   : > { %658 = vst.msk [vmem:[%s857_s15 + $0xc8] sm:$0x3f] %vm633_vm1, %v629_v22  ;;  %v409_v63 = vsel %vm406_vm2, %v407_v30, %v408_v27  ;;  %v413_v10 = vrot.slane %v354_v34, 1  ;;  %v328_v49 = vmul.f32 0.30450433, %v300_v18  ;;  %v539_v31 = vsel %vm533_vm3, %v537_v58, %v538_v36 }
  0x49   : > { %660 = vst.msk [vmem:[%s857_s15 + $0xd8] sm:$0x3f] %vm633_vm1, %v631_v60  ;;  %v477_v53 = vadd.f32 %v409_v63, %v322_v47  ;;  %v412_v20 = vsel %vm406_vm2, %v410_v13, %v411_v32  ;;  %v356_v25 = vmul.f32 0.3909913, %v300_v18  ;;  %v330_v12 = vmul.f32 0.30450433, %v302_v8 }
  0x4a   : > { %v479_v21 = vadd.f32 %v412_v20, %v324_v48  ;;  %v415_v27 = vsel %vm406_vm2, %v413_v10, %v414_v40  ;;  %v543_v34 = vrot.slane %v328_v49, 2  ;;  %v358_v30 = vmul.f32 0.3909913, %v302_v8  ;;  %v306_v32 = vld [vmem:[#allocation2 + $0x60] sm:$0xff]  ;;  %v308_v48 = vld [vmem:[#allocation2 + $0x70] sm:$0xff] }
  0x4b   : > { %v604_v47 = vadd.f32 %v536_v54, %v477_v53  ;;  %v481_v22 = vadd.f32 %v415_v27, %v326_v14  ;;  %v416_v24 = vrot.slane %v356_v25, 1  ;;  %v542_v23 = vsel %vm533_vm3, %v540_v3, %v541_v44  ;;  %v310_v60 = vld [vmem:[#allocation2 + $0x80] sm:$0xff] }
  0x4c   : > { %v606_v13 = vadd.f32 %v539_v31, %v479_v21  ;;  %v546_v36 = vrot.slane %v330_v12, 2  ;;  %v332_v18 = vmul.f32 0.30450433, %v304_v39  ;;  %v419_v10 = vrot.slane %v358_v30, 1  ;;  %v312_v31 = vld [vmem:[#allocation2 + $0x90] sm:$0xff] }
  0x4d   : > { %632 = vst.msk [vmem:[%s857_s15] sm:$0xff] %vm265_vm0, %v604_v47  ;;  %v608_v33 = vadd.f32 %v542_v23, %v481_v22  ;;  %v418_v40 = vsel %vm406_vm2, %v416_v24, %v417_v45  ;;  %v360_v14 = vmul.f32 0.3909913, %v304_v39  ;;  %v545_v28 = vsel %vm533_vm3, %v543_v34, %v544_v50 }
  0x4e   : > { %635 = vst.msk [vmem:[%s857_s15 + $0x10] sm:$0xff] %vm265_vm0, %v606_v13  ;;  %v483_v58 = vadd.f32 %v418_v40, %v328_v49  ;;  %v549_v44 = vrot.slane %v332_v18, 2  ;;  %v334_v54 = vmul.f32 0.30450433, %v306_v32  ;;  %v421_v38 = vsel %vm406_vm2, %v419_v10, %v420_v51 }
  0x4f   : > { %637 = vst.msk [vmem:[%s857_s15 + $0x20] sm:$0xff] %vm265_vm0, %v608_v33  ;;  %v422_v45 = vrot.slane %v360_v14, 1  ;;  %v362_v8 = vmul.f32 0.3909913, %v306_v32  ;;  %v336_v63 = vmul.f32 0.30450433, %v308_v48  ;;  %v485_v53 = vadd.f32 %v421_v38, %v330_v12 }
  0x50   : > { %v610_v3 = vadd.f32 %v545_v28, %v483_v58  ;;  %v548_v37 = vsel %vm533_vm3, %v546_v36, %v547_v55  ;;  %v552_v50 = vrot.slane %v334_v54, 2  ;;  %v551_v42 = vsel %vm533_vm3, %v549_v44, %v550_v57  ;;  %v314_v55 = vld [vmem:[#allocation2 + $0xa0] sm:$0xff]  ;;  %v316_v32 = vld [vmem:[#allocation2 + $0xb0] sm:$0xff] }
  0x51   : > { %v424_v49 = vsel %vm406_vm2, %v422_v45, %v423_v0  ;;  %v425_v51 = vrot.slane %v362_v8, 1  ;;  %v364_v20 = vmul.f32 0.3909913, %v308_v48  ;;  %v612_v25 = vadd.f32 %v548_v37, %v485_v53  ;;  %v318_v14 = vld [vmem:[#allocation2 + $0xc0] sm:$0xff] }
  0x52   : > { %639 = vst.msk [vmem:[%s857_s15 + $0x30] sm:$0xff] %vm265_vm0, %v610_v3  ;;  %v487_v39 = vadd.f32 %v424_v49, %v332_v18  ;;  %v555_v41 = vrot.slane %v336_v63, 2  ;;  %v338_v21 = vmul.f32 0.30450433, %v310_v60  ;;  %v554_v46 = vsel %vm533_vm3, %v552_v50, %v553_v9 }
  0x53   : > { %v427_v56 = vsel %vm406_vm2, %v425_v51, %v426_v5  ;;  %v428_v57 = vrot.slane %v364_v20, 1  ;;  %v366_v0 = vmul.f32 0.3909913, %v310_v60  ;;  %641 = vst.msk [vmem:[%s857_s15 + $0x40] sm:$0xff] %vm265_vm0, %v612_v25  ;;  %v340_v47 = vmul.f32 0.30450433, %v312_v31 }
  0x54   : > { %v614_v27 = vadd.f32 %v551_v42, %v487_v39  ;;  %v489_v34 = vadd.f32 %v427_v56, %v334_v54  ;;  %v558_v12 = vrot.slane %v338_v21, 2  ;;  %v1147_v22 = vrot.slane %v905_v2, 1  ;;  %v320_v54 = vld [vmem:[#allocation2 + $0xd0] sm:$0xff] }
  0x55   : > { %v431_v62 = vrot.slane %v366_v0, 1  ;;  %v368_v30 = vmul.f32 0.3909913, %v312_v31  ;;  %v342_v5 = vmul.f32 0.30450433, %v314_v55  ;;  %v1148_v13 = vrot.slane %v903_v1, 2 }
  0x56   : > { %v430_v24 = vsel %vm406_vm2, %v428_v57, %v1147_v22  ;;  %643 = vst.msk [vmem:[%s857_s15 + $0x50] sm:$0xff] %vm265_vm0, %v614_v27  ;;  %v616_v61 = vadd.f32 %v554_v46, %v489_v34  ;;  %v561_v36 = vrot.slane %v340_v47, 2  ;;  %v1149_v18 = vrot.slane %v921_v11, 1 }
  0x57   : > { %v491_v9 = vadd.f32 %v430_v24, %v336_v63  ;;  %v557_v23 = vsel %vm533_vm3, %v555_v41, %v1148_v13  ;;  %v1150_v48 = vrot.slane %v912_v6, 2  ;;  %v434_v40 = vrot.slane %v368_v30, 1 }
  0x58   : > { %v433_v2 = vsel %vm406_vm2, %v431_v62, %v1149_v18  ;;  %v370_v10 = vmul.f32 0.3909913, %v314_v55  ;;  %645 = vst.msk [vmem:[%s857_s15 + $0x60] sm:$0xff] %vm265_vm0, %v616_v61  ;;  %v564_v1 = vrot.slane %v342_v5, 2  ;;  %v344_v44 = vmul.f32 0.30450433, %v316_v32 }
  0x59   : > { %v560_v33 = vsel %vm533_vm3, %v558_v12, %v1150_v48  ;;  %v618_v58 = vadd.f32 %v557_v23, %v491_v9  ;;  %v493_v28 = vadd.f32 %v433_v2, %v338_v21  ;;  %v1151_v11 = vrot.slane %v938_v19, 1 }
  0x5a   : > { %v1152_v38 = vrot.slane %v930_v15, 2  ;;  %v437_v45 = vrot.slane %v370_v10, 1  ;;  %v372_v8 = vmul.f32 0.3909913, %v316_v32  ;;  %v567_v53 = vrot.slane %v344_v44, 2 }
  0x5b   : > { %v436_v60 = vsel %vm406_vm2, %v434_v40, %v1151_v11  ;;  %647 = vst.msk [vmem:[%s857_s15 + $0x70] sm:$0xff] %vm265_vm0, %v618_v58  ;;  %v620_v63 = vadd.f32 %v560_v33, %v493_v28  ;;  %v346_v37 = vmul.f32 0.30450433, %v318_v14  ;;  %v1153_v50 = vrot.slane %v945_v29, 1 }
  0x5c   : > { %v563_v6 = vsel %vm533_vm3, %v561_v36, %v1152_v38  ;;  %v495_v3 = vadd.f32 %v436_v60, %v340_v47  ;;  %v440_v19 = vrot.slane %v372_v8, 1  ;;  %v374_v42 = vmul.f32 0.3909913, %v318_v14 }
  0x5d   : > { %v439_v49 = vsel %vm406_vm2, %v437_v45, %v1153_v50  ;;  %v348_v51 = vmul.f32 0.30450433, %v320_v54  ;;  %649 = vst.msk [vmem:[%s857_s15 + $0x80] sm:$0xff] %vm265_vm0, %v620_v63  ;;  %v1154_v31 = vrot.slane %v943_v26, 2  ;;  %v1155_v39 = vrot.slane %v961_v52, 1 }
  0x5e   : > { %v622_v15 = vadd.f32 %v563_v6, %v495_v3  ;;  %v497_v20 = vadd.f32 %v439_v49, %v342_v5  ;;  %v443_v29 = vrot.slane %v374_v42, 1  ;;  %v570_v21 = vrot.slane %v346_v37, 2 }
  0x5f   : > { %v566_v25 = vsel %vm533_vm3, %v564_v1, %v1154_v31  ;;  %v442_v41 = vsel %vm406_vm2, %v440_v19, %v1155_v39  ;;  %v376_v55 = vmul.f32 0.3909913, %v320_v54  ;;  %v1156_v57 = vrot.slane %v955_v43, 2 }
  0x60   : > { %651 = vst.msk [vmem:[%s857_s15 + $0x90] sm:$0xff] %vm265_vm0, %v622_v15  ;;  %v624_v56 = vadd.f32 %v566_v25, %v497_v20  ;;  %v499_v46 = vadd.f32 %v442_v41, %v344_v44  ;;  %v1157_v0 = vrot.slane %v977_v4, 1  ;;  %v573_v34 = vrot.slane %v348_v51, 2 }
  0x61   : > { %v569_v26 = vsel %vm533_vm3, %v567_v53, %v1156_v57  ;;  %v446_v27 = vrot.slane %v376_v55, 1  ;;  %v572_v22 = vsel %vm533_vm3, %v570_v21, %v571_v16  ;;  %v1158_v24 = vrot.slane %v986_v17, 1 }
  0x62   : > { %v445_v52 = vsel %vm406_vm2, %v443_v29, %v1157_v0  ;;  %653 = vst.msk [vmem:[%s857_s15 + $0xa0] sm:$0xff] %vm265_vm0, %v624_v56  ;;  %v626_v12 = vadd.f32 %v569_v26, %v499_v46  ;;  %v575_v30 = vsel %vm533_vm3, %v573_v34, %v574_v35 }
  0x63   : > { %v501_v47 = vadd.f32 %v445_v52, %v346_v37  ;;  %v448_v43 = vsel %vm406_vm2, %v446_v27, %v1158_v24 }
  0x64   : > { %655 = vst.msk [vmem:[%s857_s15 + $0xb0] sm:$0xff] %vm265_vm0, %v626_v12  ;;  %v503_v4 = vadd.f32 %v448_v43, %v348_v51 }
  0x65   : > { %v628_v62 = vadd.f32 %v572_v22, %v501_v47 }
  0x66   : > { %v630_v5 = vadd.f32 %v575_v30, %v503_v4 }
  0x67   : > { %657 = vst.msk [vmem:[%s857_s15 + $0xc0] sm:$0xff] %vm265_vm0, %v628_v62 }
  0x68   : > { %659 = vst.msk [vmem:[%s857_s15 + $0xd0] sm:$0xff] %vm265_vm0, %v630_v5 }
  0x69 PF: > { %s11_s6 = sadd.s32 1, %s742_s6  }
  0x6a   : > { %p8_p4 = scmp.ge.s32.totalorder %s11_s6, 4  }
  0x6c   :  { %10 = sbr.rel (!%p8_p4) target bundleno = 1 (0x1), region = 54 }

</bundles_post_ra>
